<compile_context>
chip_gen: v7x
topology: tpu7x:2x2x1
jax: 0.10.0
libtpu: 0.0.40
codegen_flags: <defaults>
</compile_context>

<pallas_src>
import jax
import jax.numpy as jnp
from jax.experimental import pallas as pl
from jax.experimental.pallas import tpu as pltpu


def _leaky_relu(x, negative_slope=0.01):
    # matches torch.nn.functional.leaky_relu default slope
    return jnp.where(x > 0, x, negative_slope * x)


def _round_up(x, m):
    return ((x + m - 1) // m) * m


def dqn2_kernel(x_ref, w1_ref, w23_ref, wh_ref, b123_ref, bh_ref, out_ref):
    """One batch tile of the full dueling-DQN forward (head already folded).

    x_ref    : (TILE_B, n_in)           f32
    w1_ref   : (n_in,  n_mid_p)         bf16
    w23_ref  : (2, n_mid_p, n_mid_p)    bf16   (fc2, fc3)
    wh_ref   : (n_mid_p, n_out_p)       f32    folded dueling head
    b123_ref : (3, n_mid_p)             f32    (b1, b2, b3)
    bh_ref   : (1, n_out_p)             f32    folded head bias
    out_ref  : (TILE_B, n_out_p)        f32    (lane-dense; wrapper slices :n_out)
    """
    f32 = jnp.float32
    bf16 = jnp.bfloat16

    x = x_ref[...]                       # f32 activations
    b = b123_ref[...]                    # (3, n_mid_p) f32

    # Hidden layers: bf16 MXU inputs, f32 accumulate, f32 bias + LeakyReLU.
    h = jnp.dot(x.astype(bf16), w1_ref[...], preferred_element_type=f32)
    h = _leaky_relu(h + b[0:1, :])
    h = jnp.dot(h.astype(bf16), w23_ref[0], preferred_element_type=f32)
    h = _leaky_relu(h + b[1:2, :])
    h = jnp.dot(h.astype(bf16), w23_ref[1], preferred_element_type=f32)
    h = _leaky_relu(h + b[2:3, :])

    # Folded dueling head: one matmul directly produces val + adv - mean(adv).
    y = jnp.dot(h, wh_ref[...], preferred_element_type=f32) + bh_ref[...]
    out_ref[...] = y.astype(out_ref.dtype)


def pack_params(p, n_out):
    """Pack the 10 PyTorch-style tensors into 5 TPU-friendly buffers.

    - n_mid is padded to a multiple of 128 lanes (exact: pad lanes stay 0).
    - The dueling combination is folded into the head:
        out = adv + val - mean(adv)
            = h @ (Wa (I - 11^T/n_out) + wv 1^T) + (ba - mean(ba) + bv)
      The folded head weight/bias are kept in f32 for exact dueling numerics.
    """
    n_in, n_mid = p["w1"].shape
    n_mid_p = _round_up(n_mid, 128)
    n_out_p = _round_up(n_out, 128)

    def pad2(a, rows, cols):
        out = jnp.zeros((rows, cols), jnp.float32)
        return out.at[:a.shape[0], :a.shape[1]].set(a.astype(jnp.float32))

    w1 = pad2(p["w1"], n_in, n_mid_p).astype(jnp.bfloat16)            # (n_in, n_mid_p)
    w23 = jnp.stack([pad2(p["w2"], n_mid_p, n_mid_p),
                     pad2(p["w3"], n_mid_p, n_mid_p)]).astype(jnp.bfloat16)

    eye = jnp.eye(n_out, dtype=jnp.float32)
    proj = eye - jnp.ones((n_out, n_out), jnp.float32) / n_out
    wh_small = p["wa"].astype(jnp.float32) @ proj + p["wv"].astype(jnp.float32)
    bh_small = (p["ba"] - jnp.mean(p["ba"])) + p["bv"]                 # (1, n_out)

    wh = pad2(wh_small, n_mid_p, n_out_p)                              # f32 (n_mid_p, n_out_p)
    bh = pad2(bh_small, 1, n_out_p)                                    # f32 (1, n_out_p)

    b123 = jnp.zeros((3, n_mid_p), jnp.float32)
    b123 = b123.at[0, :n_mid].set(p["b1"][0])
    b123 = b123.at[1, :n_mid].set(p["b2"][0])
    b123 = b123.at[2, :n_mid].set(p["b3"][0])

    return w1, w23, wh, b123, bh


def _choose_tile_b(B):
    """Per-generation tiling policy.

    - B < 256: one tile (v5e/v6e have a single TC; each extra grid step costs
      ~0.35us with zero benefit).  tile_b rounded up to a multiple of 8 so all
      stores are unmasked; the grid handles the ragged overhang.
    - B >= 256: split into >=2 tiles so dimension_semantics=("parallel",) can
      engage v7x's second TensorCore; negligible cost on v5e/v6e.
    - Cap at 4096 rows/tile (~6 MiB double-buffered) -- far under VMEM on
      every generation, including v7x's 64 MiB.
    """
    if B >= 256:
        tile = _round_up(pl.cdiv(B, 2), 8)
    elif B <= 8:
        tile = B
    else:
        tile = _round_up(B, 8)
    return min(tile, 4096)


def model_dqn2_forward(x, params):
    """params: dict w1,b1,w2,b2,w3,b3,wa,ba,wv,bv with (fan_in,fan_out)/(1,fan_out) layouts."""
    B, n_in = x.shape
    n_mid = params["w2"].shape[0]
    n_out = params["wa"].shape[1]
    n_mid_p = _round_up(n_mid, 128)
    n_out_p = _round_up(n_out, 128)

    w1, w23, wh, b123, bh = pack_params(params, n_out)

    tile_b = _choose_tile_b(B)
    grid = (pl.cdiv(B, tile_b),)

    flops = 2 * B * (n_in * n_mid_p + 2 * n_mid_p * n_mid_p + n_mid_p * n_out_p)
    param_bytes = sum(int(a.size) * a.dtype.itemsize for a in (w1, w23, wh, b123, bh))
    bytes_accessed = int(x.size) * 4 + param_bytes + B * n_out_p * 4

    def build(single_buffer_weights):
        def wspec(shape, imap):
            # Constant-index operands: single-buffer (double buffering a
            # never-changing block only doubles its VMEM footprint).
            if single_buffer_weights:
                return pl.BlockSpec(shape, imap, pipeline_mode=pl.Buffered(1))
            return pl.BlockSpec(shape, imap)

        in_specs = [
            pl.BlockSpec((tile_b, n_in), lambda i: (i, 0)),     # x: streamed per tile
            wspec((n_in, n_mid_p), lambda i: (0, 0)),           # weights: resident
            wspec((2, n_mid_p, n_mid_p), lambda i: (0, 0, 0)),
            wspec((n_mid_p, n_out_p), lambda i: (0, 0)),
            wspec((3, n_mid_p), lambda i: (0, 0)),
            wspec((1, n_out_p), lambda i: (0, 0)),
        ]
        return pl.pallas_call(
            dqn2_kernel,
            out_shape=jax.ShapeDtypeStruct((B, n_out_p), jnp.float32),
            grid_spec=pltpu.PrefetchScalarGridSpec(
                num_scalar_prefetch=0,
                grid=grid,
                in_specs=in_specs,
                out_specs=pl.BlockSpec((tile_b, n_out_p), lambda i: (i, 0)),
            ),
            compiler_params=pltpu.CompilerParams(
                dimension_semantics=("parallel",),   # shard batch tiles across TCs (v7x)
            ),
            cost_estimate=pl.CostEstimate(
                flops=flops, transcendentals=0, bytes_accessed=bytes_accessed),
        )

    try:
        out_padded = build(True)(x, w1, w23, wh, b123, bh)
    except Exception:
        # pl.Buffered(1) on constant blocks is a pure VMEM-housekeeping win;
        # fall back to default double buffering if this build rejects it.
        out_padded = build(False)(x, w1, w23, wh, b123, bh)

    return out_padded[:, :n_out]


def init_params(key, n_in, n_mid, n_out):
    """Deterministic synthetic init (PyTorch-like uniform fan-in scaling)."""
    keys = jax.random.split(key, 10)

    def lin(kw, kb, fan_in, fan_out):
        bound = 1.0 / jnp.sqrt(fan_in)
        w = jax.random.uniform(kw, (fan_in, fan_out), jnp.float32, -bound, bound)
        b = jax.random.uniform(kb, (1, fan_out), jnp.float32, -bound, bound)
        return w, b

    w1, b1 = lin(keys[0], keys[1], n_in, n_mid)
    w2, b2 = lin(keys[2], keys[3], n_mid, n_mid)
    w3, b3 = lin(keys[4], keys[5], n_mid, n_mid)
    wa, ba = lin(keys[6], keys[7], n_mid, n_out)
    wv, bv = lin(keys[8], keys[9], n_mid, 1)
    return dict(w1=w1, b1=b1, w2=w2, b2=b2, w3=w3, b3=b3,
                wa=wa, ba=ba, wv=wv, bv=bv)


def reference_forward(x, p):
    """Pure-JAX reference mirroring the PyTorch module (unfused dueling head).

    Hidden layers use bf16 weights / f32 accumulation like the kernel; the
    head computes adv, val and mean(adv) separately in f32, so this also
    verifies the fold W_head' = Wa(I - 11^T/n) + wv 1^T used by the kernel.
    """
    bf16, f32 = jnp.bfloat16, jnp.float32

    def hdot(a, w):
        return jnp.dot(a.astype(bf16), w.astype(bf16), preferred_element_type=f32)

    h1 = _leaky_relu(hdot(x, p["w1"]) + p["b1"])
    h2 = _leaky_relu(hdot(h1, p["w2"]) + p["b2"])
    h3 = _leaky_relu(hdot(h2, p["w3"]) + p["b3"])
    adv = jnp.dot(h3, p["wa"], preferred_element_type=f32) + p["ba"]
    val = jnp.dot(h3, p["wv"], preferred_element_type=f32) + p["bv"]
    return val + adv - jnp.mean(adv, axis=1, keepdims=True)


if __name__ == "__main__":
    # small shapes implied by the MLP forward: x is (batch, n_in)
    B, n_in, n_mid, n_out = 8, 64, 32, 16

    key = jax.random.PRNGKey(0)
    k_x, k_p = jax.random.split(key)
    x = jax.random.normal(k_x, (B, n_in), dtype=jnp.float32)
    params = init_params(k_p, n_in, n_mid, n_out)

    out = model_dqn2_forward(x, params)
    out = jax.block_until_ready(out)

    ref = reference_forward(x, params)
    assert out.shape == (B, n_out)
    # Folded-head (pack-time) vs. post-matmul mean subtraction differ only at
    # f32/MXU rounding level; tolerance covers mixed bf16 hidden layers too.
    assert jnp.allclose(out, ref, atol=2e-3, rtol=2e-3), "mismatch vs reference"

    print("KERNEL_OK")
</pallas_src>

<mosaic_0001>
module attributes {stable_mosaic.version = 11 : i64} {
  func.func @dqn2_kernel(%arg0: i32, %arg1: memref<8x64xf32, #tpu.memory_space<vmem>>, %arg2: memref<64x128xbf16, #tpu.memory_space<vmem>>, %arg3: memref<2x128x128xbf16, #tpu.memory_space<vmem>>, %arg4: memref<128x128xf32, #tpu.memory_space<vmem>>, %arg5: memref<3x128xf32, #tpu.memory_space<vmem>>, %arg6: memref<1x128xf32, #tpu.memory_space<vmem>>, %arg7: memref<8x128xf32, #tpu.memory_space<vmem>>) attributes {dimension_semantics = [#tpu.dimension_semantics<parallel>], iteration_bounds = array<i64: 1>, scalar_prefetch = 0 : i64, scratch_operands = 0 : i64, tpu.core_type = #tpu.core_type<tc>, window_params = [{transform_indices = @transform_0, window_bounds = array<i64: 8, 64>}, {pipeline_mode = #tpu.pipeline_mode<synchronous>, transform_indices = @transform_1, window_bounds = array<i64: 64, 128>}, {pipeline_mode = #tpu.pipeline_mode<synchronous>, transform_indices = @transform_2, window_bounds = array<i64: 2, 128, 128>}, {pipeline_mode = #tpu.pipeline_mode<synchronous>, transform_indices = @transform_3, window_bounds = array<i64: 128, 128>}, {pipeline_mode = #tpu.pipeline_mode<synchronous>, transform_indices = @transform_4, window_bounds = array<i64: 3, 128>}, {pipeline_mode = #tpu.pipeline_mode<synchronous>, transform_indices = @transform_5, window_bounds = array<i64: 1, 128>}, {transform_indices = @transform_6, window_bounds = array<i64: 8, 128>}]} {
    %c0 = arith.constant 0 : index
    %c0_0 = arith.constant 0 : index
    %0 = vector.load %arg1[%c0, %c0_0] : memref<8x64xf32, #tpu.memory_space<vmem>>, vector<8x64xf32>
    %c0_1 = arith.constant 0 : index
    %c0_2 = arith.constant 0 : index
    %1 = vector.load %arg5[%c0_1, %c0_2] : memref<3x128xf32, #tpu.memory_space<vmem>>, vector<3x128xf32>
    %2 = arith.truncf %0 : vector<8x64xf32> to vector<8x64xbf16>
    %c0_3 = arith.constant 0 : index
    %c0_4 = arith.constant 0 : index
    %3 = vector.load %arg2[%c0_3, %c0_4] : memref<64x128xbf16, #tpu.memory_space<vmem>>, vector<64x128xbf16>
    %cst = arith.constant dense<0.000000e+00> : vector<8x128xf32>
    %4 = tpu.matmul %2, %3, %cst {dimension_numbers = #tpu.dot_dimension_numbers<[1], [0], [0], [1], [0, 0, 1, 1], [], []>} : vector<8x64xbf16>, vector<64x128xbf16>, vector<8x128xf32> -> vector<8x128xf32>
    %5 = vector.extract_strided_slice %1 {offsets = [0, 0], sizes = [1, 128], strides = [1, 1]} : vector<3x128xf32> to vector<1x128xf32>
    %6 = vector.broadcast %5 : vector<1x128xf32> to vector<8x128xf32>
    %7 = arith.addf %4, %6 : vector<8x128xf32>
    %cst_5 = arith.constant 0.000000e+00 : f32
    %8 = vector.broadcast %cst_5 : f32 to vector<8x128xf32>
    %9 = arith.cmpf ogt, %7, %8 : vector<8x128xf32>
    %cst_6 = arith.constant 0.00999999977 : f32
    %10 = vector.broadcast %cst_6 : f32 to vector<8x128xf32>
    %11 = arith.mulf %10, %7 : vector<8x128xf32>
    %12 = arith.select %9, %7, %11 : vector<8x128xi1>, vector<8x128xf32>
    %13 = arith.truncf %12 : vector<8x128xf32> to vector<8x128xbf16>
    %c0_7 = arith.constant 0 : index
    %c0_8 = arith.constant 0 : index
    %c0_9 = arith.constant 0 : index
    %14 = vector.load %arg3[%c0_7, %c0_8, %c0_9] : memref<2x128x128xbf16, #tpu.memory_space<vmem>>, vector<1x128x128xbf16>
    %15 = vector.shape_cast %14 : vector<1x128x128xbf16> to vector<128x128xbf16>
    %cst_10 = arith.constant dense<0.000000e+00> : vector<8x128xf32>
    %16 = tpu.matmul %13, %15, %cst_10 {dimension_numbers = #tpu.dot_dimension_numbers<[1], [0], [0], [1], [0, 0, 1, 1], [], []>} : vector<8x128xbf16>, vector<128x128xbf16>, vector<8x128xf32> -> vector<8x128xf32>
    %17 = vector.extract_strided_slice %1 {offsets = [1, 0], sizes = [1, 128], strides = [1, 1]} : vector<3x128xf32> to vector<1x128xf32>
    %18 = vector.broadcast %17 : vector<1x128xf32> to vector<8x128xf32>
    %19 = arith.addf %16, %18 : vector<8x128xf32>
    %cst_11 = arith.constant 0.000000e+00 : f32
    %20 = vector.broadcast %cst_11 : f32 to vector<8x128xf32>
    %21 = arith.cmpf ogt, %19, %20 : vector<8x128xf32>
    %cst_12 = arith.constant 0.00999999977 : f32
    %22 = vector.broadcast %cst_12 : f32 to vector<8x128xf32>
    %23 = arith.mulf %22, %19 : vector<8x128xf32>
    %24 = arith.select %21, %19, %23 : vector<8x128xi1>, vector<8x128xf32>
    %25 = arith.truncf %24 : vector<8x128xf32> to vector<8x128xbf16>
    %c1 = arith.constant 1 : index
    %c0_13 = arith.constant 0 : index
    %c0_14 = arith.constant 0 : index
    %26 = vector.load %arg3[%c1, %c0_13, %c0_14] : memref<2x128x128xbf16, #tpu.memory_space<vmem>>, vector<1x128x128xbf16>
    %27 = vector.shape_cast %26 : vector<1x128x128xbf16> to vector<128x128xbf16>
    %cst_15 = arith.constant dense<0.000000e+00> : vector<8x128xf32>
    %28 = tpu.matmul %25, %27, %cst_15 {dimension_numbers = #tpu.dot_dimension_numbers<[1], [0], [0], [1], [0, 0, 1, 1], [], []>} : vector<8x128xbf16>, vector<128x128xbf16>, vector<8x128xf32> -> vector<8x128xf32>
    %29 = vector.extract_strided_slice %1 {offsets = [2, 0], sizes = [1, 128], strides = [1, 1]} : vector<3x128xf32> to vector<1x128xf32>
    %30 = vector.broadcast %29 : vector<1x128xf32> to vector<8x128xf32>
    %31 = arith.addf %28, %30 : vector<8x128xf32>
    %cst_16 = arith.constant 0.000000e+00 : f32
    %32 = vector.broadcast %cst_16 : f32 to vector<8x128xf32>
    %33 = arith.cmpf ogt, %31, %32 : vector<8x128xf32>
    %cst_17 = arith.constant 0.00999999977 : f32
    %34 = vector.broadcast %cst_17 : f32 to vector<8x128xf32>
    %35 = arith.mulf %34, %31 : vector<8x128xf32>
    %36 = arith.select %33, %31, %35 : vector<8x128xi1>, vector<8x128xf32>
    %c0_18 = arith.constant 0 : index
    %c0_19 = arith.constant 0 : index
    %37 = vector.load %arg4[%c0_18, %c0_19] : memref<128x128xf32, #tpu.memory_space<vmem>>, vector<128x128xf32>
    %cst_20 = arith.constant dense<0.000000e+00> : vector<8x128xf32>
    %38 = tpu.matmul %36, %37, %cst_20 {dimension_numbers = #tpu.dot_dimension_numbers<[1], [0], [0], [1], [0, 0, 1, 1], [], []>} : vector<8x128xf32>, vector<128x128xf32>, vector<8x128xf32> -> vector<8x128xf32>
    %c0_21 = arith.constant 0 : index
    %c0_22 = arith.constant 0 : index
    %39 = vector.load %arg6[%c0_21, %c0_22] : memref<1x128xf32, #tpu.memory_space<vmem>>, vector<1x128xf32>
    %40 = vector.broadcast %39 : vector<1x128xf32> to vector<8x128xf32>
    %41 = arith.addf %38, %40 : vector<8x128xf32>
    %c0_23 = arith.constant 0 : index
    %c0_24 = arith.constant 0 : index
    %42 = vector.load %arg7[%c0_23, %c0_24] : memref<8x128xf32, #tpu.memory_space<vmem>>, vector<8x128xf32>
    tpu.vector_store %arg7[%c0_23, %c0_24], %41 {strides = array<i32>} : memref<8x128xf32, #tpu.memory_space<vmem>>, vector<8x128xf32>,
    return
  }
  func.func @transform_0(%arg0: i32) -> (i32, i32) {
    %c0_i32 = arith.constant 0 : i32
    %c0_i32_0 = arith.constant 0 : i32
    return %arg0, %c0_i32 : i32, i32
  }
  func.func @transform_1(%arg0: i32) -> (i32, i32) {
    %c0_i32 = arith.constant 0 : i32
    %c0_i32_0 = arith.constant 0 : i32
    %c0_i32_1 = arith.constant 0 : i32
    return %c0_i32, %c0_i32_0 : i32, i32
  }
  func.func @transform_2(%arg0: i32) -> (i32, i32, i32) {
    %c0_i32 = arith.constant 0 : i32
    %c0_i32_0 = arith.constant 0 : i32
    %c0_i32_1 = arith.constant 0 : i32
    %c0_i32_2 = arith.constant 0 : i32
    return %c0_i32, %c0_i32_0, %c0_i32_1 : i32, i32, i32
  }
  func.func @transform_3(%arg0: i32) -> (i32, i32) {
    %c0_i32 = arith.constant 0 : i32
    %c0_i32_0 = arith.constant 0 : i32
    %c0_i32_1 = arith.constant 0 : i32
    return %c0_i32, %c0_i32_0 : i32, i32
  }
  func.func @transform_4(%arg0: i32) -> (i32, i32) {
    %c0_i32 = arith.constant 0 : i32
    %c0_i32_0 = arith.constant 0 : i32
    %c0_i32_1 = arith.constant 0 : i32
    return %c0_i32, %c0_i32_0 : i32, i32
  }
  func.func @transform_5(%arg0: i32) -> (i32, i32) {
    %c0_i32 = arith.constant 0 : i32
    %c0_i32_0 = arith.constant 0 : i32
    %c0_i32_1 = arith.constant 0 : i32
    return %c0_i32, %c0_i32_0 : i32, i32
  }
  func.func @transform_6(%arg0: i32) -> (i32, i32) {
    %c0_i32 = arith.constant 0 : i32
    %c0_i32_0 = arith.constant 0 : i32
    return %arg0, %c0_i32 : i32, i32
  }
}

module attributes {stable_mosaic.version = 11 : i64} {
  func.func @dqn2_kernel(%arg0: i32, %arg1: memref<8x64xf32, #tpu.memory_space<vmem>>, %arg2: memref<64x128xbf16, #tpu.memory_space<vmem>>, %arg3: memref<2x128x128xbf16, #tpu.memory_space<vmem>>, %arg4: memref<128x128xf32, #tpu.memory_space<vmem>>, %arg5: memref<3x128xf32, #tpu.memory_space<vmem>>, %arg6: memref<1x128xf32, #tpu.memory_space<vmem>>, %arg7: memref<8x128xf32, #tpu.memory_space<vmem>>) attributes {dimension_semantics = [#tpu.dimension_semantics<parallel>], iteration_bounds = array<i64: 1>, scalar_prefetch = 0 : i64, scratch_operands = 0 : i64, tpu.core_type = #tpu.core_type<tc>, window_params = [{transform_indices = @transform_0, window_bounds = array<i64: 8, 64>}, {pipeline_mode = #tpu.pipeline_mode<synchronous>, transform_indices = @transform_1, window_bounds = array<i64: 64, 128>}, {pipeline_mode = #tpu.pipeline_mode<synchronous>, transform_indices = @transform_2, window_bounds = array<i64: 2, 128, 128>}, {pipeline_mode = #tpu.pipeline_mode<synchronous>, transform_indices = @transform_3, window_bounds = array<i64: 128, 128>}, {pipeline_mode = #tpu.pipeline_mode<synchronous>, transform_indices = @transform_4, window_bounds = array<i64: 3, 128>}, {pipeline_mode = #tpu.pipeline_mode<synchronous>, transform_indices = @transform_5, window_bounds = array<i64: 1, 128>}, {transform_indices = @transform_6, window_bounds = array<i64: 8, 128>}]} {
    %c0 = arith.constant 0 : index
    %c0_0 = arith.constant 0 : index
    %0 = vector.load %arg1[%c0, %c0_0] : memref<8x64xf32, #tpu.memory_space<vmem>>, vector<8x64xf32>
    %c0_1 = arith.constant 0 : index
    %c0_2 = arith.constant 0 : index
    %1 = vector.load %arg5[%c0_1, %c0_2] : memref<3x128xf32, #tpu.memory_space<vmem>>, vector<3x128xf32>
    %2 = arith.truncf %0 : vector<8x64xf32> to vector<8x64xbf16>
    %c0_3 = arith.constant 0 : index
    %c0_4 = arith.constant 0 : index
    %3 = vector.load %arg2[%c0_3, %c0_4] : memref<64x128xbf16, #tpu.memory_space<vmem>>, vector<64x128xbf16>
    %cst = arith.constant dense<0.000000e+00> : vector<8x128xf32>
    %4 = tpu.matmul %2, %3, %cst {dimension_numbers = #tpu.dot_dimension_numbers<[1], [0], [0], [1], [0, 0, 1, 1], [], []>} : vector<8x64xbf16>, vector<64x128xbf16>, vector<8x128xf32> -> vector<8x128xf32>
    %5 = vector.extract_strided_slice %1 {offsets = [0, 0], sizes = [1, 128], strides = [1, 1]} : vector<3x128xf32> to vector<1x128xf32>
    %6 = vector.broadcast %5 : vector<1x128xf32> to vector<8x128xf32>
    %7 = arith.addf %4, %6 : vector<8x128xf32>
    %cst_5 = arith.constant 0.000000e+00 : f32
    %8 = vector.broadcast %cst_5 : f32 to vector<8x128xf32>
    %9 = arith.cmpf ogt, %7, %8 : vector<8x128xf32>
    %cst_6 = arith.constant 0.00999999977 : f32
    %10 = vector.broadcast %cst_6 : f32 to vector<8x128xf32>
    %11 = arith.mulf %10, %7 : vector<8x128xf32>
    %12 = arith.select %9, %7, %11 : vector<8x128xi1>, vector<8x128xf32>
    %13 = arith.truncf %12 : vector<8x128xf32> to vector<8x128xbf16>
    %c0_7 = arith.constant 0 : index
    %c0_8 = arith.constant 0 : index
    %c0_9 = arith.constant 0 : index
    %14 = vector.load %arg3[%c0_7, %c0_8, %c0_9] : memref<2x128x128xbf16, #tpu.memory_space<vmem>>, vector<1x128x128xbf16>
    %15 = vector.shape_cast %14 : vector<1x128x128xbf16> to vector<128x128xbf16>
    %cst_10 = arith.constant dense<0.000000e+00> : vector<8x128xf32>
    %16 = tpu.matmul %13, %15, %cst_10 {dimension_numbers = #tpu.dot_dimension_numbers<[1], [0], [0], [1], [0, 0, 1, 1], [], []>} : vector<8x128xbf16>, vector<128x128xbf16>, vector<8x128xf32> -> vector<8x128xf32>
    %17 = vector.extract_strided_slice %1 {offsets = [1, 0], sizes = [1, 128], strides = [1, 1]} : vector<3x128xf32> to vector<1x128xf32>
    %18 = vector.broadcast %17 : vector<1x128xf32> to vector<8x128xf32>
    %19 = arith.addf %16, %18 : vector<8x128xf32>
    %cst_11 = arith.constant 0.000000e+00 : f32
    %20 = vector.broadcast %cst_11 : f32 to vector<8x128xf32>
    %21 = arith.cmpf ogt, %19, %20 : vector<8x128xf32>
    %cst_12 = arith.constant 0.00999999977 : f32
    %22 = vector.broadcast %cst_12 : f32 to vector<8x128xf32>
    %23 = arith.mulf %22, %19 : vector<8x128xf32>
    %24 = arith.select %21, %19, %23 : vector<8x128xi1>, vector<8x128xf32>
    %25 = arith.truncf %24 : vector<8x128xf32> to vector<8x128xbf16>
    %c1 = arith.constant 1 : index
    %c0_13 = arith.constant 0 : index
    %c0_14 = arith.constant 0 : index
    %26 = vector.load %arg3[%c1, %c0_13, %c0_14] : memref<2x128x128xbf16, #tpu.memory_space<vmem>>, vector<1x128x128xbf16>
    %27 = vector.shape_cast %26 : vector<1x128x128xbf16> to vector<128x128xbf16>
    %cst_15 = arith.constant dense<0.000000e+00> : vector<8x128xf32>
    %28 = tpu.matmul %25, %27, %cst_15 {dimension_numbers = #tpu.dot_dimension_numbers<[1], [0], [0], [1], [0, 0, 1, 1], [], []>} : vector<8x128xbf16>, vector<128x128xbf16>, vector<8x128xf32> -> vector<8x128xf32>
    %29 = vector.extract_strided_slice %1 {offsets = [2, 0], sizes = [1, 128], strides = [1, 1]} : vector<3x128xf32> to vector<1x128xf32>
    %30 = vector.broadcast %29 : vector<1x128xf32> to vector<8x128xf32>
    %31 = arith.addf %28, %30 : vector<8x128xf32>
    %cst_16 = arith.constant 0.000000e+00 : f32
    %32 = vector.broadcast %cst_16 : f32 to vector<8x128xf32>
    %33 = arith.cmpf ogt, %31, %32 : vector<8x128xf32>
    %cst_17 = arith.constant 0.00999999977 : f32
    %34 = vector.broadcast %cst_17 : f32 to vector<8x128xf32>
    %35 = arith.mulf %34, %31 : vector<8x128xf32>
    %36 = arith.select %33, %31, %35 : vector<8x128xi1>, vector<8x128xf32>
    %c0_18 = arith.constant 0 : index
    %c0_19 = arith.constant 0 : index
    %37 = vector.load %arg4[%c0_18, %c0_19] : memref<128x128xf32, #tpu.memory_space<vmem>>, vector<128x128xf32>
    %cst_20 = arith.constant dense<0.000000e+00> : vector<8x128xf32>
    %38 = tpu.matmul %36, %37, %cst_20 {dimension_numbers = #tpu.dot_dimension_numbers<[1], [0], [0], [1], [0, 0, 1, 1], [], []>} : vector<8x128xf32>, vector<128x128xf32>, vector<8x128xf32> -> vector<8x128xf32>
    %c0_21 = arith.constant 0 : index
    %c0_22 = arith.constant 0 : index
    %39 = vector.load %arg6[%c0_21, %c0_22] : memref<1x128xf32, #tpu.memory_space<vmem>>, vector<1x128xf32>
    %40 = vector.broadcast %39 : vector<1x128xf32> to vector<8x128xf32>
    %41 = arith.addf %38, %40 : vector<8x128xf32>
    %c0_23 = arith.constant 0 : index
    %c0_24 = arith.constant 0 : index
    %42 = vector.load %arg7[%c0_23, %c0_24] : memref<8x128xf32, #tpu.memory_space<vmem>>, vector<8x128xf32>
    tpu.vector_store %arg7[%c0_23, %c0_24], %41 {strides = array<i32>} : memref<8x128xf32, #tpu.memory_space<vmem>>, vector<8x128xf32>,
    return
  }
  func.func @transform_0(%arg0: i32) -> (i32, i32) {
    %c0_i32 = arith.constant 0 : i32
    %c0_i32_0 = arith.constant 0 : i32
    return %arg0, %c0_i32 : i32, i32
  }
  func.func @transform_1(%arg0: i32) -> (i32, i32) {
    %c0_i32 = arith.constant 0 : i32
    %c0_i32_0 = arith.constant 0 : i32
    %c0_i32_1 = arith.constant 0 : i32
    return %c0_i32, %c0_i32_0 : i32, i32
  }
  func.func @transform_2(%arg0: i32) -> (i32, i32, i32) {
    %c0_i32 = arith.constant 0 : i32
    %c0_i32_0 = arith.constant 0 : i32
    %c0_i32_1 = arith.constant 0 : i32
    %c0_i32_2 = arith.constant 0 : i32
    return %c0_i32, %c0_i32_0, %c0_i32_1 : i32, i32, i32
  }
  func.func @transform_3(%arg0: i32) -> (i32, i32) {
    %c0_i32 = arith.constant 0 : i32
    %c0_i32_0 = arith.constant 0 : i32
    %c0_i32_1 = arith.constant 0 : i32
    return %c0_i32, %c0_i32_0 : i32, i32
  }
  func.func @transform_4(%arg0: i32) -> (i32, i32) {
    %c0_i32 = arith.constant 0 : i32
    %c0_i32_0 = arith.constant 0 : i32
    %c0_i32_1 = arith.constant 0 : i32
    return %c0_i32, %c0_i32_0 : i32, i32
  }
  func.func @transform_5(%arg0: i32) -> (i32, i32) {
    %c0_i32 = arith.constant 0 : i32
    %c0_i32_0 = arith.constant 0 : i32
    %c0_i32_1 = arith.constant 0 : i32
    return %c0_i32, %c0_i32_0 : i32, i32
  }
  func.func @transform_6(%arg0: i32) -> (i32, i32) {
    %c0_i32 = arith.constant 0 : i32
    %c0_i32_0 = arith.constant 0 : i32
    return %arg0, %c0_i32 : i32, i32
  }
}

</mosaic_0001>

<bundles_post_ra>
// kernel: tpu_custom_call.1
= control target key start
LH: loop header
LB: loop body
LE: loop exit
PB: predicated region body
PF: predicated region fallthrough
CT: control target
= control target key end

     0   :  { %11 = vsyncpa [#allocation3], 0  ;;  %s980_s0 = inlined_call_operand.hbm [shape: f32[8,64], index: 0, kind: input, shape index: {}]   ;;  %s981_s1 = inlined_call_operand.hbm [shape: bf16[64,128], index: 1, kind: input, shape index: {}]   ;;  %s982_s2 = inlined_call_operand.hbm [shape: bf16[2,128,128], index: 2, kind: input, shape index: {}]   ;;  %s983_s3 = inlined_call_operand.hbm [shape: f32[128,128], index: 3, kind: input, shape index: {}]   ;;  %s984_s4 = inlined_call_operand.vmem [shape: f32[3,128], index: 4, kind: input, shape index: {}]   ;;  %s985_s5 = inlined_call_operand.vmem [shape: f32[1,128], index: 5, kind: input, shape index: {}]   ;;  %s986_s6 = inlined_call_operand.hbm [shape: f32[8,128], index: 6, kind: output, shape index: {}]  }
   0x1   :  { %12 = vsyncpa [#allocation6], 0 }
   0x2   :  { %13 = vsyncpa [#allocation9], 0 }
   0x3   :  { %14 = vsyncpa [#allocation4], 0  ;;  %s823_s21 = smov [#allocation5]   ;;  %s705_s25 = scalar_lea.hbm %s981_s1, 512 }
   0x4   :  { %s30_s22 = sshll.u32 %s823_s21, 4  ;;  %p706_p0 = scmp.ne.s32.totalorder %s981_s1, %s705_s25  ;;  %s31_s22 = int_to_ptr.vmem [resolvable:$true] %s30_s22 }
   0x5   :  { %p709_p1 = scmp.lt.u32.totalorder %s705_s25, %s981_s1 }
   0x7   :  { %p711_p2 = pnand %p709_p1, %p706_p0 }
   0x9   :  { %714 = shalt.err (!%p711_p2)
}
   0xa   :  { %s715_s30 = scalar_lea.vmem %s31_s22, 512  ;;  %p720_p4 = scmp.lt.s32.totalorder %s31_s22, %s31_s22 }
   0xb   :  { %p716_p3 = scmp.ne.s32.totalorder %s31_s22, %s715_s30  ;;  %p721_p5 = scmp.lt.s32.totalorder %s715_s30, %s715_s30 }
   0xd   :  { %p722_p6 = por %p721_p5, %p720_p4 }
   0xf   :  { %p723_p7 = pnand %p722_p6, %p716_p3 }
  0x11   :  { %726 = shalt.err (!%p723_p7)
}
  0x12   :  { %s824_s7 = smov 64   ;;  %s825_s8 = smov 4  }
  0x13   :  { %36 = dma.hbm_to_vmem [thread:$0]  %s981_s1, 512, %s31_s22, [#allocation6], %s824_s7, %s824_s7, %s825_s8  }
  0x14   :  { %s826_s11 = smov [#allocation2]   ;;  %s827_s13 = smov [#allocation7]  }
  0x15   :  { %s21_s12 = sshll.u32 %s826_s11, 4  ;;  %s42_s14 = sshll.u32 %s827_s13, 4  ;;  %s22_s12 = int_to_ptr.vmem [resolvable:$true] %s21_s12  ;;  %s43_s14 = int_to_ptr.vmem [resolvable:$true] %s42_s14 }
  0x16   :  { %s727_s17 = scalar_lea.hbm %s980_s0, 128 }
  0x17   :  { %p728_p8 = scmp.ne.s32.totalorder %s980_s0, %s727_s17  ;;  %p731_p9 = scmp.lt.u32.totalorder %s727_s17, %s980_s0 }
  0x19   :  { %p733_p10 = pnand %p731_p9, %p728_p8 }
  0x1b   :  { %736 = shalt.err (!%p733_p10)
}
  0x1c   :  { %s737_s1 = scalar_lea.vmem %s22_s12, 128  ;;  %p742_p12 = scmp.lt.s32.totalorder %s22_s12, %s22_s12 }
  0x1d   :  { %p738_p11 = scmp.ne.s32.totalorder %s22_s12, %s737_s1  ;;  %p743_p13 = scmp.lt.s32.totalorder %s737_s1, %s737_s1 }
  0x1f   :  { %p744_p0 = por %p743_p13, %p742_p12 }
  0x21   :  { %p745_p1 = pnand %p744_p0, %p738_p11 }
  0x23   :  { %748 = shalt.err (!%p745_p1)
}
  0x24   :  { %24 = dma.hbm_to_vmem [thread:$0]  %s980_s0, 128, %s22_s12, [#allocation3]  }
  0x25   :  { %s749_s26 = scalar_lea.hbm %s982_s2, 2048 }
  0x26   :  { %p750_p2 = scmp.ne.s32.totalorder %s982_s2, %s749_s26  ;;  %p753_p3 = scmp.lt.u32.totalorder %s749_s26, %s982_s2 }
  0x28   :  { %p755_p4 = pnand %p753_p3, %p750_p2 }
  0x2a   :  { %758 = shalt.err (!%p755_p4)
}
  0x2b   :  { %s759_s9 = scalar_lea.vmem %s43_s14, 2048  ;;  %p764_p6 = scmp.lt.s32.totalorder %s43_s14, %s43_s14 }
  0x2c   :  { %p760_p5 = scmp.ne.s32.totalorder %s43_s14, %s759_s9  ;;  %p765_p7 = scmp.lt.s32.totalorder %s759_s9, %s759_s9 }
  0x2e   :  { %p766_p8 = por %p765_p7, %p764_p6 }
  0x30   :  { %p767_p9 = pnand %p766_p8, %p760_p5 }
  0x32   :  { %770 = shalt.err (!%p767_p9)
}
  0x33   :  { %48 = dma.hbm_to_vmem [thread:$0]  %s982_s2, 2048, %s43_s14, [#allocation6], %s824_s7, %s824_s7, %s825_s8  }
  0x34   :  { %s828_s11 = smov [#allocation8]   ;;  %s771_s16 = scalar_lea.hbm %s983_s3, 2048 }
  0x35   :  { %s54_s12 = sshll.u32 %s828_s11, 4  ;;  %p772_p10 = scmp.ne.s32.totalorder %s983_s3, %s771_s16  ;;  %s55_s12 = int_to_ptr.vmem [resolvable:$true] %s54_s12 }
  0x36   :  { %p775_p11 = scmp.lt.u32.totalorder %s771_s16, %s983_s3 }
  0x38   :  { %p777_p12 = pnand %p775_p11, %p772_p10 }
  0x3a   :  { %780 = shalt.err (!%p777_p12)
}
  0x3b   :  { %s781_s21 = scalar_lea.vmem %s55_s12, 2048  ;;  %p786_p0 = scmp.lt.s32.totalorder %s55_s12, %s55_s12 }
  0x3c   :  { %p782_p13 = scmp.ne.s32.totalorder %s55_s12, %s781_s21  ;;  %p787_p1 = scmp.lt.s32.totalorder %s781_s21, %s781_s21 }
  0x3e   :  { %p788_p2 = por %p787_p1, %p786_p0 }
  0x40   :  { %p789_p3 = pnand %p788_p2, %p782_p13 }
  0x42   :  { %792 = shalt.err (!%p789_p3)
}
  0x43   :  { %s829_s2 = smov 128   ;;  %s830_s7 = smov 8  }
  0x44   :  { %60 = dma.hbm_to_vmem [thread:$0]  %s983_s3, 2048, %s55_s12, [#allocation9], %s829_s2, %s829_s2, %s830_s7  }
  0x45   :  { %815 = dma.done.wait [#allocation3], 128  }
  0x46   :  { %816 = vsyncadd [#allocation3], 4294967168 }
  0x47   :  { %817 = dma.done.wait [#allocation6], 2560  }
  0x48   :  { %818 = vsyncadd [#allocation6], 4294964736 }
  0x49   :  { %819 = dma.done.wait [#allocation9], 2048  }
  0x4a   :  { %820 = vsyncadd [#allocation9], 4294965248  ;;  %v831_v0 = vmov 0.0   ;;  %vm832_vm0 = vmmov 0   ;;  %v685_v1 = vld [vmem:[#allocation5] sm:$0xff]   ;;  %v686_v2 = vld [vmem:[#allocation5 + $0x8] sm:$0xff]   ;;  %v89_v21 = vlaneseq }
  0x4b   :  { %562 = vmatprep.subr.bf16.mxu0 %v831_v0  ;;  %570 = vmatprep.mubr.msk.bf16.mxu0 %vm832_vm0, %v831_v0  ;;  %v689_v3 = vld [vmem:[#allocation7] sm:$0xff]   ;;  %v687_v4 = vld [vmem:[#allocation5 + $0x10] sm:$0xff]   ;;  %v690_v5 = vld [vmem:[#allocation7 + $0x8] sm:$0xff]   ;;  %vm117_vm1 = vcmask 523264   ;;  %v833_v39 = vmov 0.0|0.0   ;;  %s834_s23 = smov [#allocation10]  }
  0x4c   :  { %574 = vmatprep.subr.bf16.mxu1 %v831_v0  ;;  %590 = vmatprep.mubr.msk.bf16.mxu1 %vm832_vm0, %v831_v0  ;;  %v688_v6 = vld [vmem:[#allocation5 + $0x18] sm:$0xff]   ;;  %v691_v8 = vld [vmem:[#allocation7 + $0x10] sm:$0xff]   ;;  %v693_v11 = vld [vmem:[#allocation7 + $0x20] sm:$0xff]   ;;  %v949_v22 = vshrl.u32 %v89_v21, 7  ;;  %s489_s24 = sshll.u32 %s834_s23, 4  ;;  %s490_s24 = int_to_ptr.vmem [resolvable:$true] %s489_s24 }
  0x4d   :  { %563 = vmatpush3.bf16.msra.mxu0 %v685_v1  ;;  %575 = vmatpush3.bf16.msra.mxu1 %v689_v3  ;;  %v78_v7 = vld [vmem:[#allocation2] sm:$0xff]  ;;  %v694_v12 = vld [vmem:[#allocation7 + $0x28] sm:$0xff]   ;;  %v695_v13 = vld [vmem:[#allocation7 + $0x30] sm:$0xff]   ;;  %s793_s25 = scalar_lea.vmem %s490_s24, 128  ;;  %p798_p5 = scmp.lt.s32.totalorder %s490_s24, %s490_s24 }
  0x4e   :  { %564 = vmatprep.subr.bf16.mxu0 %v831_v0  ;;  %576 = vmatprep.subr.bf16.mxu1 %v831_v0  ;;  %v80_v9 = vpack.c.bf16 %v78_v7, %v78_v7  ;;  %v692_v10 = vld [vmem:[#allocation7 + $0x18] sm:$0xff]   ;;  %v697_v15 = vld [vmem:[#allocation7 + $0x40] sm:$0xff]   ;;  %v698_v16 = vld [vmem:[#allocation7 + $0x48] sm:$0xff]   ;;  %v91_v23 = vsub.s32 0, %v949_v22  ;;  %v183_v58 = vsub.s32 1, %v949_v22  ;;  %v296_v7 = vsub.s32 2, %v949_v22  ;;  %p794_p4 = scmp.ne.s32.totalorder %s490_s24, %s793_s25  ;;  %p799_p6 = scmp.lt.s32.totalorder %s793_s25, %s793_s25 }
  0x4f   :  { %v696_v14 = vld [vmem:[#allocation7 + $0x38] sm:$0xff]   ;;  %v699_v17 = vld [vmem:[#allocation7 + $0x50] sm:$0xff]   ;;  %v701_v19 = vld [vmem:[#allocation7 + $0x60] sm:$0xff]  }
  0x50   :  { %v700_v18 = vld [vmem:[#allocation7 + $0x58] sm:$0xff]   ;;  %v702_v20 = vld [vmem:[#allocation7 + $0x68] sm:$0xff]   ;;  %v703_v34 = vld [vmem:[#allocation7 + $0x70] sm:$0xff]   ;;  %p800_p7 = por %p799_p6, %p798_p5 }
  0x51   :  { %565 = vmatpush3.bf16.msra.mxu0 %v686_v2  ;;  %577 = vmatpush3.bf16.msra.mxu1 %v690_v5  ;;  %v955_v24 = vld [vmem:[%s984_s4] sm:$0x7]  ;;  %v389_v36 = vld [vmem:[#allocation8] sm:$0xff]  ;;  %v390_v37 = vld [vmem:[#allocation8 + $0x8] sm:$0xff] }
  0x52   :  { %566 = vmatprep.subr.bf16.mxu0 %v831_v0  ;;  %578 = vmatprep.subr.bf16.mxu1 %v831_v0  ;;  %v92_v25 = vrot.slane %v955_v24, %v91_v23  ;;  %v704_v35 = vld [vmem:[#allocation7 + $0x78] sm:$0xff]   ;;  %v391_v38 = vld [vmem:[#allocation8 + $0x10] sm:$0xff]  ;;  %v650_v40 = vpack.c.bf16 %v390_v37, %v389_v36  ;;  %v393_v43 = vld [vmem:[#allocation8 + $0x20] sm:$0xff]  ;;  %v184_v59 = vrot.slane %v955_v24, %v183_v58  ;;  %p801_p8 = pnand %p800_p7, %p794_p4 }
  0x53   :  { %v392_v41 = vld [vmem:[#allocation8 + $0x18] sm:$0xff]  ;;  %v394_v44 = vld [vmem:[#allocation8 + $0x28] sm:$0xff]  ;;  %v395_v46 = vld [vmem:[#allocation8 + $0x30] sm:$0xff] }
  0x54   :  { %v653_v42 = vpack.c.bf16 %v392_v41, %v391_v38  ;;  %v656_v45 = vpack.c.bf16 %v394_v44, %v393_v43  ;;  %v396_v47 = vld [vmem:[#allocation8 + $0x38] sm:$0xff]  ;;  %v397_v49 = vld [vmem:[#allocation8 + $0x40] sm:$0xff]  ;;  %v398_v50 = vld [vmem:[#allocation8 + $0x48] sm:$0xff] }
  0x55   :  { %567 = vmatpush3.bf16.msra.mxu0 %v687_v4  ;;  %579 = vmatpush3.bf16.msra.mxu1 %v691_v8  ;;  %v659_v48 = vpack.c.bf16 %v396_v47, %v395_v46  ;;  %v662_v51 = vpack.c.bf16 %v398_v50, %v397_v49  ;;  %v399_v52 = vld [vmem:[#allocation8 + $0x50] sm:$0xff]  ;;  %v400_v53 = vld [vmem:[#allocation8 + $0x58] sm:$0xff]  ;;  %v401_v55 = vld [vmem:[#allocation8 + $0x60] sm:$0xff]  ;;  %v297_v8 = vrot.slane %v955_v24, %v296_v7 }
  0x56   :  { %568 = vmatprep.subr.bf16.mxu0 %v831_v0  ;;  %580 = vmatprep.subr.bf16.mxu1 %v831_v0  ;;  %v665_v54 = vpack.c.bf16 %v400_v53, %v399_v52  ;;  %v402_v56 = vld [vmem:[#allocation8 + $0x68] sm:$0xff]  ;;  %v403_v4 = vld [vmem:[#allocation8 + $0x70] sm:$0xff]  ;;  %v404_v5 = vld [vmem:[#allocation8 + $0x78] sm:$0xff] }
  0x57   :  { %v668_v57 = vpack.c.bf16 %v402_v56, %v401_v55 }
  0x59   :  { %569 = vmatpush3.bf16.msra.mxu0 %v688_v6  ;;  %581 = vmatpush3.bf16.msra.mxu1 %v692_v10  ;;  %v671_v6 = vpack.c.bf16 %v404_v5, %v403_v4 }
  0x5a   :  { %594 = vmatprep.subr.bf16.mxu0 %v831_v0  ;;  %582 = vmatprep.subr.bf16.mxu1 %v831_v0 }
  0x5c   :  { %571 = vmatmul.mubr.msk.bf16.vlgmr.msra.gmra.mrb[0].mxu0 %vm117_vm1, %v80_v9 }
  0x5d   :  { %610 = vmatprep.mubr.msk.bf16.mxu0 %vm832_vm0, %v831_v0  ;;  %583 = vmatpush3.bf16.msra.mxu1 %v693_v11 }
  0x5e   :  { %584 = vmatprep.subr.bf16.mxu1 %v831_v0  ;;  %595 = vmatpush3.bf16.msra.mxu0 %v697_v15 }
  0x5f   :  { %596 = vmatprep.subr.bf16.mxu0 %v831_v0 }
  0x61   :  { %585 = vmatpush3.bf16.msra.mxu1 %v694_v12 }
  0x62   :  { %586 = vmatprep.subr.bf16.mxu1 %v831_v0  ;;  %597 = vmatpush3.bf16.msra.mxu0 %v698_v16  ;;  %v521_v16 = vld [vmem:[%s985_s5] ss:$0 sm:$0xff] }
  0x63   :  { %598 = vmatprep.subr.bf16.mxu0 %v831_v0 }
  0x65   :  { %587 = vmatpush3.bf16.msra.mxu1 %v695_v13 }
  0x66   :  { %588 = vmatprep.subr.bf16.mxu1 %v831_v0  ;;  %599 = vmatpush3.bf16.msra.mxu0 %v699_v17 }
  0x67   :  { %600 = vmatprep.subr.bf16.mxu0 %v831_v0 }
  0x69   :  { %589 = vmatpush3.bf16.msra.mxu1 %v696_v14 }
  0x6a   :  { %601 = vmatpush3.bf16.msra.mxu0 %v700_v18  ;;  %649 = vmatprep.subr.bf16.mxu1 %v833_v39 }
  0x6b   :  { %602 = vmatprep.subr.bf16.mxu0 %v831_v0 }
  0x6e   :  { %603 = vmatpush3.bf16.msra.mxu0 %v701_v19 }
  0x6f   :  { %604 = vmatprep.subr.bf16.mxu0 %v831_v0 }
  0x72   :  { %605 = vmatpush3.bf16.msra.mxu0 %v702_v20 }
  0x73   :  { %606 = vmatprep.subr.bf16.mxu0 %v831_v0 }
  0x76   :  { %607 = vmatpush3.bf16.msra.mxu0 %v703_v34 }
  0x77   :  { %608 = vmatprep.subr.bf16.mxu0 %v831_v0 }
  0x7a   :  { %609 = vmatpush3.bf16.msra.mxu0 %v704_v35 }
 0x12f   :  { %v155_v26 = vpop.f32.mrb[0].mxu0 }
 0x130   :  { %v156_v27 = vadd.f32 %v155_v26, %v92_v25  ;;  %v572_v28 = vpop.f32.mrb[1].mxu0 }
 0x131   :  { %v158_v29 = vpop.f32.mrb[2].mxu0 }
 0x132   :  { %vm161_vm2 = vcmp.gt.f32.partialorder %v156_v27, 0.0  ;;  %v162_v30 = vmul.f32 0.01, %v156_v27  ;;  %v573_v31 = vpop.f32.mrb[3].mxu0 }
 0x134   :  { %v163_v32 = vsel %vm161_vm2, %v156_v27, %v162_v30 }
 0x135   :  { %v164_v33 = vpack.c.bf16 %v163_v32, %v163_v32 }
 0x137   :  { %591 = vmatmul.mubr.bf16.vlgmr.msra.gmra.mrb[0].mxu1 %v164_v33 }
 0x138   :  { %646 = vmatprep.mubr.msk.f32.mxu1 %vm832_vm0, %v831_v0  ;;  %651 = vmatpush3.bf16.msra.mxu1 %v650_v40 }
 0x139   :  { %652 = vmatprep.subr.bf16.mxu1 %v833_v39 }
 0x13c   :  { %654 = vmatpush3.bf16.msra.mxu1 %v653_v42 }
 0x13d   :  { %655 = vmatprep.subr.bf16.mxu1 %v833_v39 }
 0x140   :  { %657 = vmatpush3.bf16.msra.mxu1 %v656_v45 }
 0x141   :  { %658 = vmatprep.subr.bf16.mxu1 %v833_v39 }
 0x144   :  { %660 = vmatpush3.bf16.msra.mxu1 %v659_v48 }
 0x145   :  { %661 = vmatprep.subr.bf16.mxu1 %v833_v39 }
 0x148   :  { %663 = vmatpush3.bf16.msra.mxu1 %v662_v51 }
 0x149   :  { %664 = vmatprep.subr.bf16.mxu1 %v833_v39 }
 0x14c   :  { %666 = vmatpush3.bf16.msra.mxu1 %v665_v54 }
 0x14d   :  { %667 = vmatprep.subr.bf16.mxu1 %v833_v39 }
 0x150   :  { %669 = vmatpush3.bf16.msra.mxu1 %v668_v57 }
 0x151   :  { %670 = vmatprep.subr.bf16.mxu1 %v833_v39 }
 0x154   :  { %672 = vmatpush3.bf16.msra.mxu1 %v671_v6 }
 0x20a   :  { %v267_v60 = vpop.f32.mrb[0].mxu1 }
 0x20b   :  { %v268_v61 = vadd.f32 %v267_v60, %v184_v59  ;;  %v592_v62 = vpop.f32.mrb[1].mxu1 }
 0x20c   :  { %v270_v63 = vpop.f32.mrb[2].mxu1 }
 0x20d   :  { %vm273_vm3 = vcmp.gt.f32.partialorder %v268_v61, 0.0  ;;  %v274_v0 = vmul.f32 0.01, %v268_v61  ;;  %v593_v1 = vpop.f32.mrb[3].mxu1 }
 0x20f   :  { %v275_v2 = vsel %vm273_vm3, %v268_v61, %v274_v0 }
 0x210   :  { %v276_v3 = vpack.c.bf16 %v275_v2, %v275_v2 }
 0x212   :  { %611 = vmatmul.mubr.bf16.vlgmr.msra.gmra.mrb[4].mxu0 %v276_v3 }
 0x2e5   :  { %v380_v9 = vpop.f32.mrb[4].mxu0 }
 0x2e6   :  { %v381_v10 = vadd.f32 %v380_v9, %v297_v8  ;;  %v612_v11 = vpop.f32.mrb[5].mxu0 }
 0x2e7   :  { %v383_v12 = vpop.f32.mrb[6].mxu0 }
 0x2e8   :  { %vm386_vm4 = vcmp.gt.f32.partialorder %v381_v10, 0.0  ;;  %v387_v13 = vmul.f32 0.01, %v381_v10  ;;  %v613_v14 = vpop.f32.mrb[7].mxu0 }
 0x2ea   :  { %v388_v15 = vsel %vm386_vm4, %v381_v10, %v387_v13 }
 0x2eb   :  { %647 = vmatmul.mubr.f32.vlgmr.msra.gmra.mrb[4].mxu1 %v388_v15 }
 0x3be   :  { %v478_v17 = vpop.f32.mrb[4].mxu1 }
 0x3bf   :  { %v479_v18 = vadd.f32 %v521_v16, %v478_v17  ;;  %v648_v19 = vpop.f32.mrb[5].mxu1 }
 0x3c1   :  { %482 = vst [vmem:[#allocation10] sm:$0xff] %v479_v18 }
 0x3c2   :  { %804 = shalt.err (!%p801_p8)
}
 0x3c3   :  { %s805_s28 = scalar_lea.hbm %s986_s6, 128 }
 0x3c4   :  { %p806_p9 = scmp.ne.s32.totalorder %s986_s6, %s805_s28  ;;  %p809_p10 = scmp.lt.u32.totalorder %s805_s28, %s986_s6 }
 0x3c6   :  { %p811_p11 = pnand %p809_p10, %p806_p9 }
 0x3c8   :  { %814 = shalt.err (!%p811_p11)
}
 0x3c9   :  { %492 = dma.vmem_to_hbm [thread:$0]  %s490_s24, 128, %s986_s6, [#allocation4]  }
 0x3ca   :  { %821 = dma.done.wait [#allocation4], 128  }
 0x3cb   :  { %822 = vsyncadd [#allocation4], 4294967168 }
 0x3cc   :  { %496 = vsyncpa [#allocation3], 1 }
 0x3cd   :  { %497 = vsyncpa [#allocation6], 1 }
 0x3ce   :  { %498 = vsyncpa [#allocation9], 1 }
 0x3cf   :  { %499 = vsyncpa [#allocation4], 1 }

// kernel: tpu_custom_call.1
= control target key start
LH: loop header
LB: loop body
LE: loop exit
PB: predicated region body
PF: predicated region fallthrough
CT: control target
= control target key end

     0   :  { %11 = vsyncpa [#allocation3], 0  ;;  %s980_s0 = inlined_call_operand.hbm [shape: f32[8,64], index: 0, kind: input, shape index: {}]   ;;  %s981_s1 = inlined_call_operand.hbm [shape: bf16[64,128], index: 1, kind: input, shape index: {}]   ;;  %s982_s2 = inlined_call_operand.hbm [shape: bf16[2,128,128], index: 2, kind: input, shape index: {}]   ;;  %s983_s3 = inlined_call_operand.hbm [shape: f32[128,128], index: 3, kind: input, shape index: {}]   ;;  %s984_s4 = inlined_call_operand.vmem [shape: f32[3,128], index: 4, kind: input, shape index: {}]   ;;  %s985_s5 = inlined_call_operand.vmem [shape: f32[1,128], index: 5, kind: input, shape index: {}]   ;;  %s986_s6 = inlined_call_operand.hbm [shape: f32[8,128], index: 6, kind: output, shape index: {}]  }
   0x1   :  { %12 = vsyncpa [#allocation6], 0 }
   0x2   :  { %13 = vsyncpa [#allocation9], 0 }
   0x3   :  { %14 = vsyncpa [#allocation4], 0  ;;  %s823_s21 = smov [#allocation5]   ;;  %s705_s25 = scalar_lea.hbm %s981_s1, 512 }
   0x4   :  { %s30_s22 = sshll.u32 %s823_s21, 4  ;;  %p706_p0 = scmp.ne.s32.totalorder %s981_s1, %s705_s25  ;;  %s31_s22 = int_to_ptr.vmem [resolvable:$true] %s30_s22 }
   0x5   :  { %p709_p1 = scmp.lt.u32.totalorder %s705_s25, %s981_s1 }
   0x7   :  { %p711_p2 = pnand %p709_p1, %p706_p0 }
   0x9   :  { %714 = shalt.err (!%p711_p2)
}
   0xa   :  { %s715_s30 = scalar_lea.vmem %s31_s22, 512  ;;  %p720_p4 = scmp.lt.s32.totalorder %s31_s22, %s31_s22 }
   0xb   :  { %p716_p3 = scmp.ne.s32.totalorder %s31_s22, %s715_s30  ;;  %p721_p5 = scmp.lt.s32.totalorder %s715_s30, %s715_s30 }
   0xd   :  { %p722_p6 = por %p721_p5, %p720_p4 }
   0xf   :  { %p723_p7 = pnand %p722_p6, %p716_p3 }
  0x11   :  { %726 = shalt.err (!%p723_p7)
}
  0x12   :  { %s824_s7 = smov 64   ;;  %s825_s8 = smov 4  }
  0x13   :  { %36 = dma.hbm_to_vmem [thread:$0]  %s981_s1, 512, %s31_s22, [#allocation6], %s824_s7, %s824_s7, %s825_s8  }
  0x14   :  { %s826_s11 = smov [#allocation2]   ;;  %s827_s13 = smov [#allocation7]  }
  0x15   :  { %s21_s12 = sshll.u32 %s826_s11, 4  ;;  %s42_s14 = sshll.u32 %s827_s13, 4  ;;  %s22_s12 = int_to_ptr.vmem [resolvable:$true] %s21_s12  ;;  %s43_s14 = int_to_ptr.vmem [resolvable:$true] %s42_s14 }
  0x16   :  { %s727_s17 = scalar_lea.hbm %s980_s0, 128 }
  0x17   :  { %p728_p8 = scmp.ne.s32.totalorder %s980_s0, %s727_s17  ;;  %p731_p9 = scmp.lt.u32.totalorder %s727_s17, %s980_s0 }
  0x19   :  { %p733_p10 = pnand %p731_p9, %p728_p8 }
  0x1b   :  { %736 = shalt.err (!%p733_p10)
}
  0x1c   :  { %s737_s1 = scalar_lea.vmem %s22_s12, 128  ;;  %p742_p12 = scmp.lt.s32.totalorder %s22_s12, %s22_s12 }
  0x1d   :  { %p738_p11 = scmp.ne.s32.totalorder %s22_s12, %s737_s1  ;;  %p743_p13 = scmp.lt.s32.totalorder %s737_s1, %s737_s1 }
  0x1f   :  { %p744_p0 = por %p743_p13, %p742_p12 }
  0x21   :  { %p745_p1 = pnand %p744_p0, %p738_p11 }
  0x23   :  { %748 = shalt.err (!%p745_p1)
}
  0x24   :  { %24 = dma.hbm_to_vmem [thread:$0]  %s980_s0, 128, %s22_s12, [#allocation3]  }
  0x25   :  { %s749_s26 = scalar_lea.hbm %s982_s2, 2048 }
  0x26   :  { %p750_p2 = scmp.ne.s32.totalorder %s982_s2, %s749_s26  ;;  %p753_p3 = scmp.lt.u32.totalorder %s749_s26, %s982_s2 }
  0x28   :  { %p755_p4 = pnand %p753_p3, %p750_p2 }
  0x2a   :  { %758 = shalt.err (!%p755_p4)
}
  0x2b   :  { %s759_s9 = scalar_lea.vmem %s43_s14, 2048  ;;  %p764_p6 = scmp.lt.s32.totalorder %s43_s14, %s43_s14 }
  0x2c   :  { %p760_p5 = scmp.ne.s32.totalorder %s43_s14, %s759_s9  ;;  %p765_p7 = scmp.lt.s32.totalorder %s759_s9, %s759_s9 }
  0x2e   :  { %p766_p8 = por %p765_p7, %p764_p6 }
  0x30   :  { %p767_p9 = pnand %p766_p8, %p760_p5 }
  0x32   :  { %770 = shalt.err (!%p767_p9)
}
  0x33   :  { %48 = dma.hbm_to_vmem [thread:$0]  %s982_s2, 2048, %s43_s14, [#allocation6], %s824_s7, %s824_s7, %s825_s8  }
  0x34   :  { %s828_s11 = smov [#allocation8]   ;;  %s771_s16 = scalar_lea.hbm %s983_s3, 2048 }
  0x35   :  { %s54_s12 = sshll.u32 %s828_s11, 4  ;;  %p772_p10 = scmp.ne.s32.totalorder %s983_s3, %s771_s16  ;;  %s55_s12 = int_to_ptr.vmem [resolvable:$true] %s54_s12 }
  0x36   :  { %p775_p11 = scmp.lt.u32.totalorder %s771_s16, %s983_s3 }
  0x38   :  { %p777_p12 = pnand %p775_p11, %p772_p10 }
  0x3a   :  { %780 = shalt.err (!%p777_p12)
}
  0x3b   :  { %s781_s21 = scalar_lea.vmem %s55_s12, 2048  ;;  %p786_p0 = scmp.lt.s32.totalorder %s55_s12, %s55_s12 }
  0x3c   :  { %p782_p13 = scmp.ne.s32.totalorder %s55_s12, %s781_s21  ;;  %p787_p1 = scmp.lt.s32.totalorder %s781_s21, %s781_s21 }
  0x3e   :  { %p788_p2 = por %p787_p1, %p786_p0 }
  0x40   :  { %p789_p3 = pnand %p788_p2, %p782_p13 }
  0x42   :  { %792 = shalt.err (!%p789_p3)
}
  0x43   :  { %s829_s2 = smov 128   ;;  %s830_s7 = smov 8  }
  0x44   :  { %60 = dma.hbm_to_vmem [thread:$0]  %s983_s3, 2048, %s55_s12, [#allocation9], %s829_s2, %s829_s2, %s830_s7  }
  0x45   :  { %815 = dma.done.wait [#allocation3], 128  }
  0x46   :  { %816 = vsyncadd [#allocation3], 4294967168 }
  0x47   :  { %817 = dma.done.wait [#allocation6], 2560  }
  0x48   :  { %818 = vsyncadd [#allocation6], 4294964736 }
  0x49   :  { %819 = dma.done.wait [#allocation9], 2048  }
  0x4a   :  { %820 = vsyncadd [#allocation9], 4294965248  ;;  %v831_v0 = vmov 0.0   ;;  %vm832_vm0 = vmmov 0   ;;  %v685_v1 = vld [vmem:[#allocation5] sm:$0xff]   ;;  %v686_v2 = vld [vmem:[#allocation5 + $0x8] sm:$0xff]   ;;  %v89_v21 = vlaneseq }
  0x4b   :  { %562 = vmatprep.subr.bf16.mxu0 %v831_v0  ;;  %570 = vmatprep.mubr.msk.bf16.mxu0 %vm832_vm0, %v831_v0  ;;  %v689_v3 = vld [vmem:[#allocation7] sm:$0xff]   ;;  %v687_v4 = vld [vmem:[#allocation5 + $0x10] sm:$0xff]   ;;  %v690_v5 = vld [vmem:[#allocation7 + $0x8] sm:$0xff]   ;;  %vm117_vm1 = vcmask 523264   ;;  %v833_v39 = vmov 0.0|0.0   ;;  %s834_s23 = smov [#allocation10]  }
  0x4c   :  { %574 = vmatprep.subr.bf16.mxu1 %v831_v0  ;;  %590 = vmatprep.mubr.msk.bf16.mxu1 %vm832_vm0, %v831_v0  ;;  %v688_v6 = vld [vmem:[#allocation5 + $0x18] sm:$0xff]   ;;  %v691_v8 = vld [vmem:[#allocation7 + $0x10] sm:$0xff]   ;;  %v693_v11 = vld [vmem:[#allocation7 + $0x20] sm:$0xff]   ;;  %v949_v22 = vshrl.u32 %v89_v21, 7  ;;  %s489_s24 = sshll.u32 %s834_s23, 4  ;;  %s490_s24 = int_to_ptr.vmem [resolvable:$true] %s489_s24 }
  0x4d   :  { %563 = vmatpush3.bf16.msra.mxu0 %v685_v1  ;;  %575 = vmatpush3.bf16.msra.mxu1 %v689_v3  ;;  %v78_v7 = vld [vmem:[#allocation2] sm:$0xff]  ;;  %v694_v12 = vld [vmem:[#allocation7 + $0x28] sm:$0xff]   ;;  %v695_v13 = vld [vmem:[#allocation7 + $0x30] sm:$0xff]   ;;  %s793_s25 = scalar_lea.vmem %s490_s24, 128  ;;  %p798_p5 = scmp.lt.s32.totalorder %s490_s24, %s490_s24 }
  0x4e   :  { %564 = vmatprep.subr.bf16.mxu0 %v831_v0  ;;  %576 = vmatprep.subr.bf16.mxu1 %v831_v0  ;;  %v80_v9 = vpack.c.bf16 %v78_v7, %v78_v7  ;;  %v692_v10 = vld [vmem:[#allocation7 + $0x18] sm:$0xff]   ;;  %v697_v15 = vld [vmem:[#allocation7 + $0x40] sm:$0xff]   ;;  %v698_v16 = vld [vmem:[#allocation7 + $0x48] sm:$0xff]   ;;  %v91_v23 = vsub.s32 0, %v949_v22  ;;  %v183_v58 = vsub.s32 1, %v949_v22  ;;  %v296_v7 = vsub.s32 2, %v949_v22  ;;  %p794_p4 = scmp.ne.s32.totalorder %s490_s24, %s793_s25  ;;  %p799_p6 = scmp.lt.s32.totalorder %s793_s25, %s793_s25 }
  0x4f   :  { %v696_v14 = vld [vmem:[#allocation7 + $0x38] sm:$0xff]   ;;  %v699_v17 = vld [vmem:[#allocation7 + $0x50] sm:$0xff]   ;;  %v701_v19 = vld [vmem:[#allocation7 + $0x60] sm:$0xff]  }
  0x50   :  { %v700_v18 = vld [vmem:[#allocation7 + $0x58] sm:$0xff]   ;;  %v702_v20 = vld [vmem:[#allocation7 + $0x68] sm:$0xff]   ;;  %v703_v34 = vld [vmem:[#allocation7 + $0x70] sm:$0xff]   ;;  %p800_p7 = por %p799_p6, %p798_p5 }
  0x51   :  { %565 = vmatpush3.bf16.msra.mxu0 %v686_v2  ;;  %577 = vmatpush3.bf16.msra.mxu1 %v690_v5  ;;  %v955_v24 = vld [vmem:[%s984_s4] sm:$0x7]  ;;  %v389_v36 = vld [vmem:[#allocation8] sm:$0xff]  ;;  %v390_v37 = vld [vmem:[#allocation8 + $0x8] sm:$0xff] }
  0x52   :  { %566 = vmatprep.subr.bf16.mxu0 %v831_v0  ;;  %578 = vmatprep.subr.bf16.mxu1 %v831_v0  ;;  %v92_v25 = vrot.slane %v955_v24, %v91_v23  ;;  %v704_v35 = vld [vmem:[#allocation7 + $0x78] sm:$0xff]   ;;  %v391_v38 = vld [vmem:[#allocation8 + $0x10] sm:$0xff]  ;;  %v650_v40 = vpack.c.bf16 %v390_v37, %v389_v36  ;;  %v393_v43 = vld [vmem:[#allocation8 + $0x20] sm:$0xff]  ;;  %v184_v59 = vrot.slane %v955_v24, %v183_v58  ;;  %p801_p8 = pnand %p800_p7, %p794_p4 }
  0x53   :  { %v392_v41 = vld [vmem:[#allocation8 + $0x18] sm:$0xff]  ;;  %v394_v44 = vld [vmem:[#allocation8 + $0x28] sm:$0xff]  ;;  %v395_v46 = vld [vmem:[#allocation8 + $0x30] sm:$0xff] }
  0x54   :  { %v653_v42 = vpack.c.bf16 %v392_v41, %v391_v38  ;;  %v656_v45 = vpack.c.bf16 %v394_v44, %v393_v43  ;;  %v396_v47 = vld [vmem:[#allocation8 + $0x38] sm:$0xff]  ;;  %v397_v49 = vld [vmem:[#allocation8 + $0x40] sm:$0xff]  ;;  %v398_v50 = vld [vmem:[#allocation8 + $0x48] sm:$0xff] }
  0x55   :  { %567 = vmatpush3.bf16.msra.mxu0 %v687_v4  ;;  %579 = vmatpush3.bf16.msra.mxu1 %v691_v8  ;;  %v659_v48 = vpack.c.bf16 %v396_v47, %v395_v46  ;;  %v662_v51 = vpack.c.bf16 %v398_v50, %v397_v49  ;;  %v399_v52 = vld [vmem:[#allocation8 + $0x50] sm:$0xff]  ;;  %v400_v53 = vld [vmem:[#allocation8 + $0x58] sm:$0xff]  ;;  %v401_v55 = vld [vmem:[#allocation8 + $0x60] sm:$0xff]  ;;  %v297_v8 = vrot.slane %v955_v24, %v296_v7 }
  0x56   :  { %568 = vmatprep.subr.bf16.mxu0 %v831_v0  ;;  %580 = vmatprep.subr.bf16.mxu1 %v831_v0  ;;  %v665_v54 = vpack.c.bf16 %v400_v53, %v399_v52  ;;  %v402_v56 = vld [vmem:[#allocation8 + $0x68] sm:$0xff]  ;;  %v403_v4 = vld [vmem:[#allocation8 + $0x70] sm:$0xff]  ;;  %v404_v5 = vld [vmem:[#allocation8 + $0x78] sm:$0xff] }
  0x57   :  { %v668_v57 = vpack.c.bf16 %v402_v56, %v401_v55 }
  0x59   :  { %569 = vmatpush3.bf16.msra.mxu0 %v688_v6  ;;  %581 = vmatpush3.bf16.msra.mxu1 %v692_v10  ;;  %v671_v6 = vpack.c.bf16 %v404_v5, %v403_v4 }
  0x5a   :  { %594 = vmatprep.subr.bf16.mxu0 %v831_v0  ;;  %582 = vmatprep.subr.bf16.mxu1 %v831_v0 }
  0x5c   :  { %571 = vmatmul.mubr.msk.bf16.vlgmr.msra.gmra.mrb[0].mxu0 %vm117_vm1, %v80_v9 }
  0x5d   :  { %610 = vmatprep.mubr.msk.bf16.mxu0 %vm832_vm0, %v831_v0  ;;  %583 = vmatpush3.bf16.msra.mxu1 %v693_v11 }
  0x5e   :  { %584 = vmatprep.subr.bf16.mxu1 %v831_v0  ;;  %595 = vmatpush3.bf16.msra.mxu0 %v697_v15 }
  0x5f   :  { %596 = vmatprep.subr.bf16.mxu0 %v831_v0 }
  0x61   :  { %585 = vmatpush3.bf16.msra.mxu1 %v694_v12 }
  0x62   :  { %586 = vmatprep.subr.bf16.mxu1 %v831_v0  ;;  %597 = vmatpush3.bf16.msra.mxu0 %v698_v16  ;;  %v521_v16 = vld [vmem:[%s985_s5] ss:$0 sm:$0xff] }
  0x63   :  { %598 = vmatprep.subr.bf16.mxu0 %v831_v0 }
  0x65   :  { %587 = vmatpush3.bf16.msra.mxu1 %v695_v13 }
  0x66   :  { %588 = vmatprep.subr.bf16.mxu1 %v831_v0  ;;  %599 = vmatpush3.bf16.msra.mxu0 %v699_v17 }
  0x67   :  { %600 = vmatprep.subr.bf16.mxu0 %v831_v0 }
  0x69   :  { %589 = vmatpush3.bf16.msra.mxu1 %v696_v14 }
  0x6a   :  { %601 = vmatpush3.bf16.msra.mxu0 %v700_v18  ;;  %649 = vmatprep.subr.bf16.mxu1 %v833_v39 }
  0x6b   :  { %602 = vmatprep.subr.bf16.mxu0 %v831_v0 }
  0x6e   :  { %603 = vmatpush3.bf16.msra.mxu0 %v701_v19 }
  0x6f   :  { %604 = vmatprep.subr.bf16.mxu0 %v831_v0 }
  0x72   :  { %605 = vmatpush3.bf16.msra.mxu0 %v702_v20 }
  0x73   :  { %606 = vmatprep.subr.bf16.mxu0 %v831_v0 }
  0x76   :  { %607 = vmatpush3.bf16.msra.mxu0 %v703_v34 }
  0x77   :  { %608 = vmatprep.subr.bf16.mxu0 %v831_v0 }
  0x7a   :  { %609 = vmatpush3.bf16.msra.mxu0 %v704_v35 }
 0x12f   :  { %v155_v26 = vpop.f32.mrb[0].mxu0 }
 0x130   :  { %v156_v27 = vadd.f32 %v155_v26, %v92_v25  ;;  %v572_v28 = vpop.f32.mrb[1].mxu0 }
 0x131   :  { %v158_v29 = vpop.f32.mrb[2].mxu0 }
 0x132   :  { %vm161_vm2 = vcmp.gt.f32.partialorder %v156_v27, 0.0  ;;  %v162_v30 = vmul.f32 0.01, %v156_v27  ;;  %v573_v31 = vpop.f32.mrb[3].mxu0 }
 0x134   :  { %v163_v32 = vsel %vm161_vm2, %v156_v27, %v162_v30 }
 0x135   :  { %v164_v33 = vpack.c.bf16 %v163_v32, %v163_v32 }
 0x137   :  { %591 = vmatmul.mubr.bf16.vlgmr.msra.gmra.mrb[0].mxu1 %v164_v33 }
 0x138   :  { %646 = vmatprep.mubr.msk.f32.mxu1 %vm832_vm0, %v831_v0  ;;  %651 = vmatpush3.bf16.msra.mxu1 %v650_v40 }
 0x139   :  { %652 = vmatprep.subr.bf16.mxu1 %v833_v39 }
 0x13c   :  { %654 = vmatpush3.bf16.msra.mxu1 %v653_v42 }
 0x13d   :  { %655 = vmatprep.subr.bf16.mxu1 %v833_v39 }
 0x140   :  { %657 = vmatpush3.bf16.msra.mxu1 %v656_v45 }
 0x141   :  { %658 = vmatprep.subr.bf16.mxu1 %v833_v39 }
 0x144   :  { %660 = vmatpush3.bf16.msra.mxu1 %v659_v48 }
 0x145   :  { %661 = vmatprep.subr.bf16.mxu1 %v833_v39 }
 0x148   :  { %663 = vmatpush3.bf16.msra.mxu1 %v662_v51 }
 0x149   :  { %664 = vmatprep.subr.bf16.mxu1 %v833_v39 }
 0x14c   :  { %666 = vmatpush3.bf16.msra.mxu1 %v665_v54 }
 0x14d   :  { %667 = vmatprep.subr.bf16.mxu1 %v833_v39 }
 0x150   :  { %669 = vmatpush3.bf16.msra.mxu1 %v668_v57 }
 0x151   :  { %670 = vmatprep.subr.bf16.mxu1 %v833_v39 }
 0x154   :  { %672 = vmatpush3.bf16.msra.mxu1 %v671_v6 }
 0x20a   :  { %v267_v60 = vpop.f32.mrb[0].mxu1 }
 0x20b   :  { %v268_v61 = vadd.f32 %v267_v60, %v184_v59  ;;  %v592_v62 = vpop.f32.mrb[1].mxu1 }
 0x20c   :  { %v270_v63 = vpop.f32.mrb[2].mxu1 }
 0x20d   :  { %vm273_vm3 = vcmp.gt.f32.partialorder %v268_v61, 0.0  ;;  %v274_v0 = vmul.f32 0.01, %v268_v61  ;;  %v593_v1 = vpop.f32.mrb[3].mxu1 }
 0x20f   :  { %v275_v2 = vsel %vm273_vm3, %v268_v61, %v274_v0 }
 0x210   :  { %v276_v3 = vpack.c.bf16 %v275_v2, %v275_v2 }
 0x212   :  { %611 = vmatmul.mubr.bf16.vlgmr.msra.gmra.mrb[4].mxu0 %v276_v3 }
 0x2e5   :  { %v380_v9 = vpop.f32.mrb[4].mxu0 }
 0x2e6   :  { %v381_v10 = vadd.f32 %v380_v9, %v297_v8  ;;  %v612_v11 = vpop.f32.mrb[5].mxu0 }
 0x2e7   :  { %v383_v12 = vpop.f32.mrb[6].mxu0 }
 0x2e8   :  { %vm386_vm4 = vcmp.gt.f32.partialorder %v381_v10, 0.0  ;;  %v387_v13 = vmul.f32 0.01, %v381_v10  ;;  %v613_v14 = vpop.f32.mrb[7].mxu0 }
 0x2ea   :  { %v388_v15 = vsel %vm386_vm4, %v381_v10, %v387_v13 }
 0x2eb   :  { %647 = vmatmul.mubr.f32.vlgmr.msra.gmra.mrb[4].mxu1 %v388_v15 }
 0x3be   :  { %v478_v17 = vpop.f32.mrb[4].mxu1 }
 0x3bf   :  { %v479_v18 = vadd.f32 %v521_v16, %v478_v17  ;;  %v648_v19 = vpop.f32.mrb[5].mxu1 }
 0x3c1   :  { %482 = vst [vmem:[#allocation10] sm:$0xff] %v479_v18 }
 0x3c2   :  { %804 = shalt.err (!%p801_p8)
}
 0x3c3   :  { %s805_s28 = scalar_lea.hbm %s986_s6, 128 }
 0x3c4   :  { %p806_p9 = scmp.ne.s32.totalorder %s986_s6, %s805_s28  ;;  %p809_p10 = scmp.lt.u32.totalorder %s805_s28, %s986_s6 }
 0x3c6   :  { %p811_p11 = pnand %p809_p10, %p806_p9 }
 0x3c8   :  { %814 = shalt.err (!%p811_p11)
}
 0x3c9   :  { %492 = dma.vmem_to_hbm [thread:$0]  %s490_s24, 128, %s986_s6, [#allocation4]  }
 0x3ca   :  { %821 = dma.done.wait [#allocation4], 128  }
 0x3cb   :  { %822 = vsyncadd [#allocation4], 4294967168 }
 0x3cc   :  { %496 = vsyncpa [#allocation3], 1 }
 0x3cd   :  { %497 = vsyncpa [#allocation6], 1 }
 0x3ce   :  { %498 = vsyncpa [#allocation9], 1 }
 0x3cf   :  { %499 = vsyncpa [#allocation4], 1 }

</bundles_post_ra>
